<compile_context>
chip_gen: v7x
topology: tpu7x:2x2x1
jax: 0.10.0
libtpu: 0.0.40
codegen_flags: <defaults>
</compile_context>

<pallas_src>
import functools

import jax
import jax.numpy as jnp
from jax.experimental import pallas as pl
from jax.experimental.pallas import tpu as pltpu

EPS = 1e-5
TILE_ROWS = 512      # node-tile rows: multiple of 256 (v6e MXU), 128 (v5e) and
                     # 16 (bf16 sublane packing); keeps VMEM use small.


def _round_up(x, m):
    return ((x + m - 1) // m) * m


def _node_tiling(n):
    """Return (n_pad, tile_n) for the node dimension."""
    if n <= TILE_ROWS:
        n_pad = _round_up(max(n, 16), 16)
        return n_pad, n_pad
    n_pad = _round_up(n, TILE_ROWS)
    return n_pad, TILE_ROWS


# ----------------------------------------------------------------------------
# Pass A: y1 = x @ W1 + b1 per tile, accumulate BN1 sum / sum-sq
# ----------------------------------------------------------------------------
def _l1_kernel(x_ref, w_ref, b_ref, y_ref, s_ref, sq_ref,
               *, n_valid, tile_n, need_mask):
    i = pl.program_id(0)

    @pl.when(i == 0)
    def _():
        s_ref[...] = jnp.zeros_like(s_ref)
        sq_ref[...] = jnp.zeros_like(sq_ref)

    y = jnp.dot(x_ref[...], w_ref[...],
                preferred_element_type=jnp.float32) + b_ref[...]
    if need_mask:
        # mask padded rows out of the BN statistics
        row = i * tile_n + jax.lax.broadcasted_iota(jnp.int32, y.shape, 0)
        ym = jnp.where(row < n_valid, y, 0.0)
    else:
        ym = y
    s_ref[...] += jnp.sum(ym, axis=0, keepdims=True)
    sq_ref[...] += jnp.sum(ym * ym, axis=0, keepdims=True)
    y_ref[...] = y.astype(y_ref.dtype)


def _layer1(x_bf, w1_bf, b1, n_valid, tile_n, n_pad):
    f_in = x_bf.shape[1]
    f1 = w1_bf.shape[1]
    kernel = functools.partial(_l1_kernel, n_valid=n_valid, tile_n=tile_n,
                               need_mask=(n_pad != n_valid))
    return pl.pallas_call(
        kernel,
        out_shape=(
            jax.ShapeDtypeStruct((n_pad, f1), jnp.bfloat16),
            jax.ShapeDtypeStruct((1, f1), jnp.float32),
            jax.ShapeDtypeStruct((1, f1), jnp.float32),
        ),
        grid_spec=pltpu.PrefetchScalarGridSpec(
            num_scalar_prefetch=0,
            grid=(n_pad // tile_n,),
            in_specs=[
                pl.BlockSpec((tile_n, f_in), lambda i: (i, 0)),   # x tile (bf16)
                pl.BlockSpec((f_in, f1), lambda i: (0, 0)),       # W1 (resident)
                pl.BlockSpec((1, f1), lambda i: (0, 0)),          # b1
            ],
            out_specs=[
                pl.BlockSpec((tile_n, f1), lambda i: (i, 0)),     # y1 tile (bf16)
                pl.BlockSpec((1, f1), lambda i: (0, 0)),          # sum   (acc)
                pl.BlockSpec((1, f1), lambda i: (0, 0)),          # sumsq (acc)
            ],
        ),
        compiler_params=pltpu.CompilerParams(
            dimension_semantics=("arbitrary",)),
    )(x_bf, w1_bf, b1)


# ----------------------------------------------------------------------------
# Pass B: h1 = relu(BN1(y1)) fused with y2 = h1 @ W2 + b2; accumulate BN2 stats
# ----------------------------------------------------------------------------
def _l2_kernel(y1_ref, s1_ref, sq1_ref, g1_ref, be1_ref, w2_ref, b2_ref,
               y2_ref, s2_ref, sq2_ref, *, n_valid, tile_n, need_mask):
    i = pl.program_id(0)

    @pl.when(i == 0)
    def _():
        s2_ref[...] = jnp.zeros_like(s2_ref)
        sq2_ref[...] = jnp.zeros_like(sq2_ref)

    inv_n = jnp.float32(1.0 / n_valid)
    mean1 = s1_ref[...] * inv_n
    var1 = jnp.maximum(sq1_ref[...] * inv_n - mean1 * mean1, 0.0)
    scale1 = g1_ref[...] * jax.lax.rsqrt(var1 + EPS)
    shift1 = be1_ref[...] - mean1 * scale1

    h1 = jnp.maximum(y1_ref[...].astype(jnp.float32) * scale1 + shift1, 0.0)
    y2 = jnp.dot(h1.astype(jnp.bfloat16), w2_ref[...],
                 preferred_element_type=jnp.float32) + b2_ref[...]

    if need_mask:
        row = i * tile_n + jax.lax.broadcasted_iota(jnp.int32, y2.shape, 0)
        y2m = jnp.where(row < n_valid, y2, 0.0)
    else:
        y2m = y2
    s2_ref[...] += jnp.sum(y2m, axis=0, keepdims=True)
    sq2_ref[...] += jnp.sum(y2m * y2m, axis=0, keepdims=True)
    y2_ref[...] = y2.astype(y2_ref.dtype)


def _layer2(y1, s1, sq1, g1, be1, w2_bf, b2, n_valid, tile_n, n_pad):
    f1 = y1.shape[1]
    f2 = w2_bf.shape[1]
    kernel = functools.partial(_l2_kernel, n_valid=n_valid, tile_n=tile_n,
                               need_mask=(n_pad != n_valid))
    return pl.pallas_call(
        kernel,
        out_shape=(
            jax.ShapeDtypeStruct((n_pad, f2), jnp.bfloat16),
            jax.ShapeDtypeStruct((1, f2), jnp.float32),
            jax.ShapeDtypeStruct((1, f2), jnp.float32),
        ),
        grid_spec=pltpu.PrefetchScalarGridSpec(
            num_scalar_prefetch=0,
            grid=(n_pad // tile_n,),
            in_specs=[
                pl.BlockSpec((tile_n, f1), lambda i: (i, 0)),   # y1 tile (bf16)
                pl.BlockSpec((1, f1), lambda i: (0, 0)),        # sum1
                pl.BlockSpec((1, f1), lambda i: (0, 0)),        # sumsq1
                pl.BlockSpec((1, f1), lambda i: (0, 0)),        # gamma1
                pl.BlockSpec((1, f1), lambda i: (0, 0)),        # beta1
                pl.BlockSpec((f1, f2), lambda i: (0, 0)),       # W2 (resident)
                pl.BlockSpec((1, f2), lambda i: (0, 0)),        # b2
            ],
            out_specs=[
                pl.BlockSpec((tile_n, f2), lambda i: (i, 0)),   # y2 tile (bf16)
                pl.BlockSpec((1, f2), lambda i: (0, 0)),        # sum2   (acc)
                pl.BlockSpec((1, f2), lambda i: (0, 0)),        # sumsq2 (acc)
            ],
        ),
        compiler_params=pltpu.CompilerParams(
            dimension_semantics=("arbitrary",)),
    )(y1, s1, sq1, g1, be1, w2_bf, b2)


# ----------------------------------------------------------------------------
# Pass C: h2 = relu(BN2(y2)); pooled += sel @ h2 per tile; finalize head
# ----------------------------------------------------------------------------
def _head_kernel(y2_ref, s2_ref, sq2_ref, g2_ref, be2_ref, sel_ref, invc_ref,
                 wfc_ref, bfc_ref, wfc1_ref, bfc1_ref, out_ref, pooled_ref,
                 *, n_valid):
    i = pl.program_id(0)

    @pl.when(i == 0)
    def _():
        pooled_ref[...] = jnp.zeros_like(pooled_ref)

    inv_n = jnp.float32(1.0 / n_valid)
    mean2 = s2_ref[...] * inv_n
    var2 = jnp.maximum(sq2_ref[...] * inv_n - mean2 * mean2, 0.0)
    scale2 = g2_ref[...] * jax.lax.rsqrt(var2 + EPS)
    shift2 = be2_ref[...] - mean2 * scale2

    h2 = jnp.maximum(y2_ref[...].astype(jnp.float32) * scale2 + shift2, 0.0)
    # sel has zero columns for padded node rows -> pooled sums stay exact.
    pooled_ref[...] += jnp.dot(sel_ref[...], h2,
                               preferred_element_type=jnp.float32)

    @pl.when(i == pl.num_programs(0) - 1)
    def _():
        pooled = pooled_ref[...] * invc_ref[...]          # global_mean_pool
        h = jnp.dot(pooled.astype(jnp.bfloat16), wfc_ref[...],
                    preferred_element_type=jnp.float32) + bfc_ref[...]
        h = jnp.maximum(h, 0.0)                           # fc + ReLU
        # TODO(synk): Dropout(0.3) in eval mode == identity.
        out = jnp.dot(h.astype(jnp.bfloat16), wfc1_ref[...],
                      preferred_element_type=jnp.float32) + bfc1_ref[...]
        out_ref[...] = out                                # fc1 (lane-dense)


def _head(y2, s2, sq2, g2, be2, sel, inv_counts, wfc_p, bfc_p, wfc1_p, bfc1_p,
          n_valid, tile_n, n_pad):
    f2 = y2.shape[1]
    g_pad = sel.shape[0]
    fc_pad = wfc_p.shape[1]
    c_pad = wfc1_p.shape[1]
    kernel = functools.partial(_head_kernel, n_valid=n_valid)
    return pl.pallas_call(
        kernel,
        out_shape=jax.ShapeDtypeStruct((g_pad, c_pad), jnp.float32),
        grid_spec=pltpu.PrefetchScalarGridSpec(
            num_scalar_prefetch=0,
            grid=(n_pad // tile_n,),
            in_specs=[
                pl.BlockSpec((tile_n, f2), lambda i: (i, 0)),    # y2 tile (bf16)
                pl.BlockSpec((1, f2), lambda i: (0, 0)),         # sum2
                pl.BlockSpec((1, f2), lambda i: (0, 0)),         # sumsq2
                pl.BlockSpec((1, f2), lambda i: (0, 0)),         # gamma2
                pl.BlockSpec((1, f2), lambda i: (0, 0)),         # beta2
                pl.BlockSpec((g_pad, tile_n), lambda i: (0, i)), # sel tile
                pl.BlockSpec((g_pad, 1), lambda i: (0, 0)),      # 1/counts
                pl.BlockSpec((f2, fc_pad), lambda i: (0, 0)),    # Wfc
                pl.BlockSpec((1, fc_pad), lambda i: (0, 0)),     # bfc
                pl.BlockSpec((fc_pad, c_pad), lambda i: (0, 0)), # Wfc1
                pl.BlockSpec((1, c_pad), lambda i: (0, 0)),      # bfc1
            ],
            out_specs=pl.BlockSpec((g_pad, c_pad), lambda i: (0, 0)),
            scratch_shapes=[pltpu.VMEM((g_pad, f2), jnp.float32)],
        ),
        compiler_params=pltpu.CompilerParams(
            dimension_semantics=("arbitrary",)),
    )(y2, s2, sq2, g2, be2, sel, inv_counts, wfc_p, bfc_p, wfc1_p, bfc1_p)


# ----------------------------------------------------------------------------
# Parameters (deterministic init) and forward pass
# ----------------------------------------------------------------------------
def init_params(key, feature, out_channel):
    ks = jax.random.split(key, 4)

    def glorot(k, shape):
        lim = jnp.sqrt(6.0 / (shape[0] + shape[1]))
        return jax.random.uniform(k, shape, jnp.float32, -lim, lim)

    return dict(
        # GConv1: ChebConv(feature, 1024, K=1) + bn1
        w1=glorot(ks[0], (feature, 1024)),
        b1=jnp.zeros((1, 1024), jnp.float32),
        g1=jnp.ones((1, 1024), jnp.float32),
        be1=jnp.zeros((1, 1024), jnp.float32),
        # GConv2: ChebConv(1024, 512, K=1) + bn2
        w2=glorot(ks[1], (1024, 512)),
        b2=jnp.zeros((1, 512), jnp.float32),
        g2=jnp.ones((1, 512), jnp.float32),
        be2=jnp.zeros((1, 512), jnp.float32),
        # fc: Linear(512, 200) + ReLU
        wfc=glorot(ks[2], (512, 200)),
        bfc=jnp.zeros((1, 200), jnp.float32),
        # fc1: Linear(200, out_channel)
        wfc1=glorot(ks[3], (200, out_channel)),
        bfc1=jnp.zeros((1, out_channel), jnp.float32),
    )


def graphsage_forward(params, x, edge_index, batch, num_graphs):
    del edge_index  # ChebConv K=1 uses only T_0(L)x = x
    n, _ = x.shape
    out_c = params["wfc1"].shape[1]
    fc_dim = params["wfc"].shape[1]

    n_pad, tile_n = _node_tiling(n)
    g_pad = max(8, _round_up(num_graphs, 8))
    fc_pad = _round_up(fc_dim, 128)          # 200 -> 256 (lane-dense)
    c_pad = _round_up(out_c, 128)            # 10  -> 128 (lane-dense store)

    # --- host-side (cheap) padding / prep -----------------------------------
    x_p = jnp.pad(x, ((0, n_pad - n), (0, 0))).astype(jnp.bfloat16)
    w1_bf = params["w1"].astype(jnp.bfloat16)
    w2_bf = params["w2"].astype(jnp.bfloat16)

    batch_p = jnp.concatenate(
        [batch.astype(jnp.int32),
         jnp.full((n_pad - n,), g_pad, jnp.int32)])
    sel = (batch_p[None, :] ==
           jnp.arange(g_pad, dtype=jnp.int32)[:, None]).astype(jnp.float32)
    counts = jnp.sum(sel, axis=1, keepdims=True)
    inv_counts = jnp.where(counts > 0, 1.0 / counts, 0.0).astype(jnp.float32)

    wfc_p = jnp.pad(params["wfc"], ((0, 0), (0, fc_pad - fc_dim))
                    ).astype(jnp.bfloat16)
    bfc_p = jnp.pad(params["bfc"], ((0, 0), (0, fc_pad - fc_dim)))
    wfc1_p = jnp.pad(params["wfc1"], ((0, fc_pad - fc_dim), (0, c_pad - out_c))
                     ).astype(jnp.bfloat16)
    bfc1_p = jnp.pad(params["bfc1"], ((0, 0), (0, c_pad - out_c)))

    # --- Pass A: GConv1 matmul + BN1 stats -----------------------------------
    y1, s1, sq1 = _layer1(x_p, w1_bf, params["b1"], n, tile_n, n_pad)

    # TODO(synk): EdgePooling (greedy data-dependent edge contraction) has no
    # clean Pallas equivalent; identity on (x, edge_index, batch).

    # --- Pass B: BN1+ReLU fused into GConv2 matmul + BN2 stats ---------------
    y2, s2, sq2 = _layer2(y1, s1, sq1, params["g1"], params["be1"],
                          w2_bf, params["b2"], n, tile_n, n_pad)

    # --- Pass C: BN2+ReLU, global_mean_pool, fc+ReLU, dropout(eval), fc1 -----
    out_pad = _head(y2, s2, sq2, params["g2"], params["be2"], sel, inv_counts,
                    wfc_p, bfc_p, wfc1_p, bfc1_p, n, tile_n, n_pad)
    return out_pad[:num_graphs, :out_c]


def _reference(params, x, batch, num_graphs):
    """Pure-JAX f32 reference of the same forward pass (eval dropout)."""
    y1 = x @ params["w1"] + params["b1"]
    m1 = y1.mean(0, keepdims=True)
    v1 = y1.var(0, keepdims=True)
    h1 = jnp.maximum((y1 - m1) * jax.lax.rsqrt(v1 + EPS) * params["g1"]
                     + params["be1"], 0.0)
    y2 = h1 @ params["w2"] + params["b2"]
    m2 = y2.mean(0, keepdims=True)
    v2 = y2.var(0, keepdims=True)
    h2 = jnp.maximum((y2 - m2) * jax.lax.rsqrt(v2 + EPS) * params["g2"]
                     + params["be2"], 0.0)
    sel = (batch[None, :] ==
           jnp.arange(num_graphs)[:, None]).astype(jnp.float32)
    pooled = (sel @ h2) / jnp.sum(sel, axis=1, keepdims=True)
    h = jnp.maximum(pooled @ params["wfc"] + params["bfc"], 0.0)
    return h @ params["wfc1"] + params["bfc1"]


if __name__ == "__main__":
    FEATURE = 16       # input node-feature dim
    OUT_CHANNEL = 10   # number of classes
    N = 8              # nodes (2 graphs x 4 nodes)
    G = 2              # graphs in the batch
    E = 16             # edges (unused by ChebConv K=1)

    key = jax.random.PRNGKey(0)
    k_p, k_x, k_e = jax.random.split(key, 3)

    params = init_params(k_p, FEATURE, OUT_CHANNEL)
    x = jax.random.normal(k_x, (N, FEATURE), jnp.float32)
    edge_index = jax.random.randint(k_e, (2, E), 0, N, jnp.int32)
    batch = jnp.array([0, 0, 0, 0, 1, 1, 1, 1], jnp.int32)

    out = graphsage_forward(params, x, edge_index, batch, G)
    out = jax.block_until_ready(out)
    assert out.shape == (G, OUT_CHANNEL)
    assert bool(jnp.all(jnp.isfinite(out)))

    # Loose sanity check vs an f32 reference (kernel uses bf16 MXU operands).
    ref = _reference(params, x, batch, G)
    max_err = float(jnp.max(jnp.abs(out - ref)))
    assert max_err < 0.5, f"mismatch vs reference: max abs err = {max_err}"

    print("KERNEL_OK")
</pallas_src>

<mosaic_0001>
module attributes {stable_mosaic.version = 11 : i64} {
  func.func @_l1_kernel(%arg0: i32, %arg1: memref<16x16xbf16, #tpu.memory_space<vmem>>, %arg2: memref<16x1024xbf16, #tpu.memory_space<vmem>>, %arg3: memref<1x1024xf32, #tpu.memory_space<vmem>>, %arg4: memref<16x1024xbf16, #tpu.memory_space<vmem>>, %arg5: memref<1x1024xf32, #tpu.memory_space<vmem>>, %arg6: memref<1x1024xf32, #tpu.memory_space<vmem>>) attributes {dimension_semantics = [#tpu.dimension_semantics<arbitrary>], iteration_bounds = array<i64: 1>, scalar_prefetch = 0 : i64, scratch_operands = 0 : i64, tpu.core_type = #tpu.core_type<tc>, window_params = [{transform_indices = @transform_0, window_bounds = array<i64: 16, 16>}, {pipeline_mode = #tpu.pipeline_mode<synchronous>, transform_indices = @transform_1, window_bounds = array<i64: 16, 1024>}, {pipeline_mode = #tpu.pipeline_mode<synchronous>, transform_indices = @transform_2, window_bounds = array<i64: 1, 1024>}, {transform_indices = @transform_3, window_bounds = array<i64: 16, 1024>}, {pipeline_mode = #tpu.pipeline_mode<synchronous>, transform_indices = @transform_4, window_bounds = array<i64: 1, 1024>}, {pipeline_mode = #tpu.pipeline_mode<synchronous>, transform_indices = @transform_5, window_bounds = array<i64: 1, 1024>}]} {
    %c0_i32 = arith.constant 0 : i32
    %0 = arith.cmpi eq, %arg0, %c0_i32 : i32
    %1 = arith.extui %0 : i1 to i32
    %c0_i32_0 = arith.constant 0 : i32
    %2 = arith.cmpi ne, %1, %c0_i32_0 : i32
    scf.if %2 {
      %cst_19 = arith.constant 0.000000e+00 : f32
      %30 = vector.broadcast %cst_19 : f32 to vector<1x1024xf32>
      %c0_20 = arith.constant 0 : index
      %c0_21 = arith.constant 0 : index
      %31 = vector.load %arg5[%c0_20, %c0_21] : memref<1x1024xf32, #tpu.memory_space<vmem>>, vector<1x1024xf32>
      tpu.vector_store %arg5[%c0_20, %c0_21], %30 {strides = array<i32>} : memref<1x1024xf32, #tpu.memory_space<vmem>>, vector<1x1024xf32>,
      %cst_22 = arith.constant 0.000000e+00 : f32
      %32 = vector.broadcast %cst_22 : f32 to vector<1x1024xf32>
      %c0_23 = arith.constant 0 : index
      %c0_24 = arith.constant 0 : index
      %33 = vector.load %arg6[%c0_23, %c0_24] : memref<1x1024xf32, #tpu.memory_space<vmem>>, vector<1x1024xf32>
      tpu.vector_store %arg6[%c0_23, %c0_24], %32 {strides = array<i32>} : memref<1x1024xf32, #tpu.memory_space<vmem>>, vector<1x1024xf32>,
    } else {
    }
    %c0 = arith.constant 0 : index
    %c0_1 = arith.constant 0 : index
    %3 = vector.load %arg1[%c0, %c0_1] : memref<16x16xbf16, #tpu.memory_space<vmem>>, vector<16x16xbf16>
    %c0_2 = arith.constant 0 : index
    %c0_3 = arith.constant 0 : index
    %4 = vector.load %arg2[%c0_2, %c0_3] : memref<16x1024xbf16, #tpu.memory_space<vmem>>, vector<16x1024xbf16>
    %cst = arith.constant dense<0.000000e+00> : vector<16x1024xf32>
    %5 = tpu.matmul %3, %4, %cst {dimension_numbers = #tpu.dot_dimension_numbers<[1], [0], [0], [1], [0, 0, 1, 1], [], []>} : vector<16x16xbf16>, vector<16x1024xbf16>, vector<16x1024xf32> -> vector<16x1024xf32>
    %c0_4 = arith.constant 0 : index
    %c0_5 = arith.constant 0 : index
    %6 = vector.load %arg3[%c0_4, %c0_5] : memref<1x1024xf32, #tpu.memory_space<vmem>>, vector<1x1024xf32>
    %7 = vector.broadcast %6 : vector<1x1024xf32> to vector<16x1024xf32>
    %8 = arith.addf %5, %7 : vector<16x1024xf32>
    %c16_i32 = arith.constant 16 : i32
    %9 = arith.muli %arg0, %c16_i32 : i32
    %10 = tpu.iota {dimensions = array<i32: 0>} : vector<16x1024xi32>
    %11 = vector.broadcast %9 : i32 to vector<16x1024xi32>
    %12 = arith.addi %11, %10 : vector<16x1024xi32>
    %c8_i32 = arith.constant 8 : i32
    %13 = vector.broadcast %c8_i32 : i32 to vector<16x1024xi32>
    %14 = arith.cmpi slt, %12, %13 : vector<16x1024xi32>
    %cst_6 = arith.constant 0.000000e+00 : f32
    %15 = vector.broadcast %cst_6 : f32 to vector<16x1024xf32>
    %16 = arith.select %14, %8, %15 : vector<16x1024xi1>, vector<16x1024xf32>
    %c0_7 = arith.constant 0 : index
    %c0_8 = arith.constant 0 : index
    %17 = vector.load %arg5[%c0_7, %c0_8] : memref<1x1024xf32, #tpu.memory_space<vmem>>, vector<1x1024xf32>
    %cst_9 = arith.constant dense<0.000000e+00> : vector<1024xf32>
    %18 = vector.multi_reduction <add>, %16, %cst_9 [0] : vector<16x1024xf32> to vector<1024xf32>
    %19 = vector.shape_cast %18 : vector<1024xf32> to vector<1x1024xf32>
    %20 = arith.addf %17, %19 : vector<1x1024xf32>
    %c0_10 = arith.constant 0 : index
    %c0_11 = arith.constant 0 : index
    %21 = vector.load %arg5[%c0_10, %c0_11] : memref<1x1024xf32, #tpu.memory_space<vmem>>, vector<1x1024xf32>
    tpu.vector_store %arg5[%c0_10, %c0_11], %20 {strides = array<i32>} : memref<1x1024xf32, #tpu.memory_space<vmem>>, vector<1x1024xf32>,
    %c0_12 = arith.constant 0 : index
    %c0_13 = arith.constant 0 : index
    %22 = vector.load %arg6[%c0_12, %c0_13] : memref<1x1024xf32, #tpu.memory_space<vmem>>, vector<1x1024xf32>
    %23 = arith.mulf %16, %16 : vector<16x1024xf32>
    %cst_14 = arith.constant dense<0.000000e+00> : vector<1024xf32>
    %24 = vector.multi_reduction <add>, %23, %cst_14 [0] : vector<16x1024xf32> to vector<1024xf32>
    %25 = vector.shape_cast %24 : vector<1024xf32> to vector<1x1024xf32>
    %26 = arith.addf %22, %25 : vector<1x1024xf32>
    %c0_15 = arith.constant 0 : index
    %c0_16 = arith.constant 0 : index
    %27 = vector.load %arg6[%c0_15, %c0_16] : memref<1x1024xf32, #tpu.memory_space<vmem>>, vector<1x1024xf32>
    tpu.vector_store %arg6[%c0_15, %c0_16], %26 {strides = array<i32>} : memref<1x1024xf32, #tpu.memory_space<vmem>>, vector<1x1024xf32>,
    %28 = arith.truncf %8 : vector<16x1024xf32> to vector<16x1024xbf16>
    %c0_17 = arith.constant 0 : index
    %c0_18 = arith.constant 0 : index
    %29 = vector.load %arg4[%c0_17, %c0_18] : memref<16x1024xbf16, #tpu.memory_space<vmem>>, vector<16x1024xbf16>
    tpu.vector_store %arg4[%c0_17, %c0_18], %28 {strides = array<i32>} : memref<16x1024xbf16, #tpu.memory_space<vmem>>, vector<16x1024xbf16>,
    return
  }
  func.func @transform_0(%arg0: i32) -> (i32, i32) {
    %c0_i32 = arith.constant 0 : i32
    %c0_i32_0 = arith.constant 0 : i32
    return %arg0, %c0_i32 : i32, i32
  }
  func.func @transform_1(%arg0: i32) -> (i32, i32) {
    %c0_i32 = arith.constant 0 : i32
    %c0_i32_0 = arith.constant 0 : i32
    %c0_i32_1 = arith.constant 0 : i32
    return %c0_i32, %c0_i32_0 : i32, i32
  }
  func.func @transform_2(%arg0: i32) -> (i32, i32) {
    %c0_i32 = arith.constant 0 : i32
    %c0_i32_0 = arith.constant 0 : i32
    %c0_i32_1 = arith.constant 0 : i32
    return %c0_i32, %c0_i32_0 : i32, i32
  }
  func.func @transform_3(%arg0: i32) -> (i32, i32) {
    %c0_i32 = arith.constant 0 : i32
    %c0_i32_0 = arith.constant 0 : i32
    return %arg0, %c0_i32 : i32, i32
  }
  func.func @transform_4(%arg0: i32) -> (i32, i32) {
    %c0_i32 = arith.constant 0 : i32
    %c0_i32_0 = arith.constant 0 : i32
    %c0_i32_1 = arith.constant 0 : i32
    return %c0_i32, %c0_i32_0 : i32, i32
  }
  func.func @transform_5(%arg0: i32) -> (i32, i32) {
    %c0_i32 = arith.constant 0 : i32
    %c0_i32_0 = arith.constant 0 : i32
    %c0_i32_1 = arith.constant 0 : i32
    return %c0_i32, %c0_i32_0 : i32, i32
  }
}

</mosaic_0001>

<bundles_post_ra>
// kernel: tpu_custom_call.1
= control target key start
LH: loop header
LB: loop body
LE: loop exit
PB: predicated region body
PF: predicated region fallthrough
CT: control target
= control target key end

     0   :  { %11 = vsyncpa [#allocation3], 0  ;;  %s1137_s0 = inlined_call_operand.hbm [shape: bf16[16,16], index: 0, kind: input, shape index: {}]   ;;  %s1138_s1 = inlined_call_operand.hbm [shape: bf16[16,1024], index: 1, kind: input, shape index: {}]   ;;  %s1139_s2 = inlined_call_operand.hbm [shape: f32[1,1024], index: 2, kind: input, shape index: {}]   ;;  %s1140_s3 = inlined_call_operand.hbm [shape: bf16[16,1024], index: 3, kind: output, shape index: {0}]   ;;  %s1141_s4 = inlined_call_operand.hbm [shape: f32[1,1024], index: 4, kind: output, shape index: {1}]   ;;  %s1142_s5 = inlined_call_operand.hbm [shape: f32[1,1024], index: 5, kind: output, shape index: {2}]  }
   0x1   :  { %12 = vsyncpa [#allocation6], 0 }
   0x2   :  { %13 = vsyncpa [#allocation4], 0 }
   0x3   :  { %14 = vsyncpa [#allocation10], 0  ;;  %s897_s18 = smov [#allocation5]   ;;  %s757_s22 = scalar_lea.hbm %s1138_s1, 1024 }
   0x4   :  { %s32_s19 = sshll.u32 %s897_s18, 4  ;;  %p758_p0 = scmp.ne.s32.totalorder %s1138_s1, %s757_s22  ;;  %s33_s19 = int_to_ptr.vmem [resolvable:$true] %s32_s19 }
   0x5   :  { %p761_p1 = scmp.lt.u32.totalorder %s757_s22, %s1138_s1 }
   0x7   :  { %p763_p2 = pnand %p761_p1, %p758_p0 }
   0x9   :  { %766 = shalt.err (!%p763_p2)
}
   0xa   :  { %s767_s27 = scalar_lea.vmem %s33_s19, 1024  ;;  %p772_p4 = scmp.lt.s32.totalorder %s33_s19, %s33_s19 }
   0xb   :  { %p768_p3 = scmp.ne.s32.totalorder %s33_s19, %s767_s27  ;;  %p773_p5 = scmp.lt.s32.totalorder %s767_s27, %s767_s27 }
   0xd   :  { %p774_p6 = por %p773_p5, %p772_p4 }
   0xf   :  { %p775_p7 = pnand %p774_p6, %p768_p3 }
  0x11   :  { %778 = shalt.err (!%p775_p7)
}
  0x12   :  { %s898_s28 = smov 512   ;;  %s899_s29 = smov 32  }
  0x13   :  { %38 = dma.hbm_to_vmem [thread:$0]  %s1138_s1, 1024, %s33_s19, [#allocation6], %s898_s28, %s898_s28, %s899_s29  }
  0x14   :  { %s900_s7 = smov [#allocation2]   ;;  %s779_s11 = scalar_lea.hbm %s1137_s0, 128 }
  0x15   :  { %s20_s8 = sshll.u32 %s900_s7, 4  ;;  %p780_p8 = scmp.ne.s32.totalorder %s1137_s0, %s779_s11  ;;  %s21_s8 = int_to_ptr.vmem [resolvable:$true] %s20_s8 }
  0x16   :  { %p783_p9 = scmp.lt.u32.totalorder %s779_s11, %s1137_s0 }
  0x18   :  { %p785_p10 = pnand %p783_p9, %p780_p8 }
  0x1a   :  { %788 = shalt.err (!%p785_p10)
}
  0x1b   :  { %s789_s16 = scalar_lea.vmem %s21_s8, 128  ;;  %p794_p12 = scmp.lt.s32.totalorder %s21_s8, %s21_s8 }
  0x1c   :  { %p790_p11 = scmp.ne.s32.totalorder %s21_s8, %s789_s16  ;;  %p795_p13 = scmp.lt.s32.totalorder %s789_s16, %s789_s16 }
  0x1e   :  { %p796_p0 = por %p795_p13, %p794_p12 }
  0x20   :  { %p797_p1 = pnand %p796_p0, %p790_p11 }
  0x22   :  { %800 = shalt.err (!%p797_p1)
}
  0x23   :  { %s901_s1 = smov 64   ;;  %s902_s17 = smov 4  }
  0x24   :  { %26 = dma.hbm_to_vmem [thread:$0]  %s1137_s0, 128, %s21_s8, [#allocation3], %s901_s1, %s901_s1, %s902_s17  }
  0x25   :  { %s903_s20 = smov [#allocation7]   ;;  %s801_s24 = scalar_lea.hbm %s1139_s2, 128 }
  0x26   :  { %s45_s21 = sshll.u32 %s903_s20, 4  ;;  %p802_p2 = scmp.ne.s32.totalorder %s1139_s2, %s801_s24  ;;  %s46_s21 = int_to_ptr.vmem [resolvable:$true] %s45_s21 }
  0x27   :  { %p805_p3 = scmp.lt.u32.totalorder %s801_s24, %s1139_s2 }
  0x29   :  { %p807_p4 = pnand %p805_p3, %p802_p2 }
  0x2b   :  { %810 = shalt.err (!%p807_p4)
}
  0x2c   :  { %s811_s6 = scalar_lea.vmem %s46_s21, 128  ;;  %p816_p6 = scmp.lt.s32.totalorder %s46_s21, %s46_s21 }
  0x2d   :  { %p812_p5 = scmp.ne.s32.totalorder %s46_s21, %s811_s6  ;;  %p817_p7 = scmp.lt.s32.totalorder %s811_s6, %s811_s6 }
  0x2f   :  { %p818_p8 = por %p817_p7, %p816_p6 }
  0x31   :  { %p819_p9 = pnand %p818_p8, %p812_p5 }
  0x33   :  { %822 = shalt.err (!%p819_p9)
}
  0x34   :  { %48 = dma.hbm_to_vmem [thread:$0]  %s1139_s2, 128, %s46_s21, [#allocation6]  }
  0x35   :  { %889 = dma.done.wait [#allocation3], 128  }
  0x36   :  { %890 = vsyncadd [#allocation3], 4294967168 }
  0x37   :  { %891 = dma.done.wait [#allocation6], 1152  }
  0x38   :  { %892 = vsyncadd [#allocation6], 4294966144  ;;  %v904_v0 = vmov 0   ;;  %v67_v1 = vld [vmem:[#allocation5] sm:$0xff]  ;;  %v68_v3 = vld [vmem:[#allocation5 + $0x8] sm:$0xff]  ;;  %vm162_vm0 = vcmask 130048   ;;  %v77_v18 = vlaneseq }
  0x39   :  { %198 = vmatprep.mubr.bf16.mxu0 %v904_v0  ;;  %241 = vmatprep.mubr.bf16.mxu1 %v904_v0  ;;  %v71_v2 = vld [vmem:[#allocation5 + $0x20] sm:$0xff]  ;;  %v72_v5 = vld [vmem:[#allocation5 + $0x28] sm:$0xff]  ;;  %v69_v9 = vld [vmem:[#allocation5 + $0x10] sm:$0xff]  ;;  %v905_v24 = vmov 1966171168   ;;  %s906_s2 = smov [#allocation8]  }
  0x3a   :  { %v716_v4 = vcombine.high %v67_v1, %v71_v2  ;;  %v715_v6 = vcombine.low %v67_v1, %v71_v2  ;;  %v718_v7 = vcombine.high %v68_v3, %v72_v5  ;;  %v717_v8 = vcombine.low %v68_v3, %v72_v5  ;;  %v73_v10 = vld [vmem:[#allocation5 + $0x30] sm:$0xff]  ;;  %v756_v11 = vld [vmem:[#allocation2] sm:$0xff]   ;;  %v75_v21 = vld [vmem:[#allocation7] sm:$0xff]  ;;  %s674_s8 = sshll.u32 %s906_s2, 4  ;;  %s675_s8 = int_to_ptr.vmem [resolvable:$true] %s674_s8 }
  0x3b   :  { %v720_v12 = vcombine.high %v69_v9, %v73_v10  ;;  %v70_v13 = vld [vmem:[#allocation5 + $0x18] sm:$0xff]  ;;  %v719_v15 = vcombine.low %v69_v9, %v73_v10  ;;  %v78_v19 = vshrl.u32 %v77_v18, 7  ;;  %v433_v25 = vunpack.c.l.s4 %v905_v24  ;;  %s823_s9 = scalar_lea.vmem %s675_s8, 1024  ;;  %p828_p11 = scmp.lt.s32.totalorder %s675_s8, %s675_s8 }
  0x3c   :  { %166 = vmatprep.subr.bf16.mxu0 %v716_v4  ;;  %v74_v14 = vld [vmem:[#allocation5 + $0x38] sm:$0xff]  ;;  %209 = vmatprep.subr.bf16.mxu1 %v718_v7  ;;  %p824_p10 = scmp.ne.s32.totalorder %s675_s8, %s823_s9  ;;  %p829_p12 = scmp.lt.s32.totalorder %s823_s9, %s823_s9 }
  0x3d   :  { %167 = vmatpush1.bf16.msra.mxu0 %v715_v6  ;;  %v722_v16 = vcombine.high %v70_v13, %v74_v14  ;;  %210 = vmatpush1.bf16.msra.mxu1 %v717_v8  ;;  %v721_v17 = vcombine.low %v70_v13, %v74_v14  ;;  %v79_v20 = vsub.s32 0, %v78_v19  ;;  %v87_v22 = vsub.s32 2, %v78_v19 }
  0x3e   :  { %252 = vmatprep.subr.bf16.mxu0 %v720_v12  ;;  %v83_v23 = vsub.s32 1, %v78_v19  ;;  %v91_v26 = vsub.s32 3, %v78_v19  ;;  %v95_v28 = vsub.s32 4, %v78_v19  ;;  %v103_v29 = vsub.s32 6, %v78_v19  ;;  %p830_p13 = por %p829_p12, %p828_p11 }
  0x3f   :  { %295 = vmatprep.subr.bf16.mxu1 %v722_v16  ;;  %v80_v27 = vrot.slane %v75_v21, %v79_v20  ;;  %v99_v30 = vsub.s32 5, %v78_v19  ;;  %v978_v31 = vrot.slane %v75_v21, %v87_v22  ;;  %v107_v33 = vsub.s32 7, %v78_v19 }
  0x40   :  { %723 = vmatmul.mubr.msk.bf16.vlgmr.msra.gmra.mrb[0].mxu0 %vm162_vm0, %v756_v11  ;;  %724 = vmatmul.mubr.msk.bf16.vlgmr.msra.gmra.mrb[0].mxu1 %vm162_vm0, %v756_v11  ;;  %v980_v32 = vrot.slane %v75_v21, %v83_v23  ;;  %v434_v34 = vunpack.c.0.s8 %v433_v25  ;;  %v982_v35 = vrot.slane %v75_v21, %v91_v26  ;;  %v984_v40 = vrot.slane %v75_v21, %v95_v28  ;;  %p831_p0 = pnand %p830_p13, %p824_p10 }
  0x41   :  { %253 = vmatpush1.bf16.msra.mxu0 %v719_v15  ;;  %296 = vmatpush1.bf16.msra.mxu1 %v721_v17  ;;  %v986_v41 = vrot.slane %v75_v21, %v103_v29  ;;  %v988_v42 = vrot.slane %v75_v21, %v99_v30  ;;  %v994_v47 = vrot.slane %v75_v21, %v107_v33 }
  0x42   :  { %284 = vmatprep.mubr.bf16.mxu0 %v904_v0  ;;  %327 = vmatprep.mubr.bf16.mxu1 %v904_v0  ;;  %v996_v48 = vsub.s32 %v434_v34, %v78_v19 }
  0x48   :  { %725 = vmatmul.mubr.msk.bf16.vlgmr.msra.gmra.mrb[4].mxu0 %vm162_vm0, %v756_v11  ;;  %726 = vmatmul.mubr.msk.bf16.vlgmr.msra.gmra.mrb[4].mxu1 %vm162_vm0, %v756_v11 }
 0x113   :  { %v200_v36 = vpop.f32.mrb[0].mxu0  ;;  %v243_v38 = vpop.f32.mrb[0].mxu1 }
 0x114   :  { %v201_v37 = vadd.f32 %v200_v36, %v80_v27  ;;  %v202_v39 = vpop.f32.mrb[1].mxu0  ;;  %v991_v43 = vadd.f32 %v243_v38, %v978_v31  ;;  %v245_v45 = vpop.f32.mrb[1].mxu1 }
 0x115   :  { %v203_v44 = vadd.f32 %v202_v39, %v980_v32  ;;  %v204_v46 = vpop.f32.mrb[2].mxu0  ;;  %v999_v51 = vadd.f32 %v245_v45, %v982_v35  ;;  %v1003_v53 = vpop.f32.mrb[2].mxu1 }
 0x116   :  { %v365_v49 = vrot.slane %v201_v37, 4  ;;  %v481_v50 = vmul.f32 %v201_v37, %v201_v37  ;;  %v1001_v52 = vadd.f32 %v204_v46, %v80_v27  ;;  %v1005_v54 = vpop.f32.mrb[3].mxu0  ;;  %v379_v55 = vrot.slane %v991_v43, 4  ;;  %v249_v59 = vpop.f32.mrb[3].mxu1 }
 0x117   :  { %v483_v56 = vmul.f32 %v991_v43, %v991_v43  ;;  %v372_v57 = vrot.slane %v203_v44, 4  ;;  %v482_v58 = vmul.f32 %v203_v44, %v203_v44  ;;  %v735_v62 = vpack.c.bf16 %v203_v44, %v201_v37 }
 0x118   :  { %v366_v60 = vadd.f32 %v365_v49, %v201_v37  ;;  %v498_v61 = vrot.slane %v481_v50, 4  ;;  %v386_v63 = vrot.slane %v999_v51, 4  ;;  %v380_v0 = vadd.f32 %v379_v55, %v991_v43 }
 0x119   :  { %v512_v1 = vrot.slane %v483_v56, 4  ;;  %v373_v2 = vadd.f32 %v372_v57, %v203_v44  ;;  %v505_v3 = vrot.slane %v482_v58, 4  ;;  %661 = vst [vmem:[#allocation8] sm:$0xff] %v735_v62  ;;  %v484_v7 = vmul.f32 %v999_v51, %v999_v51 }
 0x11a   :  { %v367_v4 = vrot.slane %v366_v60, 2  ;;  %v499_v5 = vadd.f32 %v498_v61, %v481_v50  ;;  %v387_v6 = vadd.f32 %v386_v63, %v999_v51  ;;  %v381_v8 = vrot.slane %v380_v0, 2 }
 0x11b   :  { %v513_v9 = vadd.f32 %v512_v1, %v483_v56  ;;  %v374_v10 = vrot.slane %v373_v2, 2  ;;  %v506_v11 = vadd.f32 %v505_v3, %v482_v58  ;;  %v286_v12 = vpop.f32.mrb[4].mxu0  ;;  %v519_v16 = vrot.slane %v484_v7, 4  ;;  %v329_v17 = vpop.f32.mrb[4].mxu1 }
 0x11c   :  { %v368_v13 = vadd.f32 %v367_v4, %v366_v60  ;;  %v500_v14 = vrot.slane %v499_v5, 2  ;;  %v388_v15 = vrot.slane %v387_v6, 2  ;;  %v288_v18 = vpop.f32.mrb[5].mxu0  ;;  %v382_v19 = vadd.f32 %v381_v8, %v380_v0  ;;  %v331_v23 = vpop.f32.mrb[5].mxu1 }
 0x11d   :  { %v514_v20 = vrot.slane %v513_v9, 2  ;;  %v375_v21 = vadd.f32 %v374_v10, %v373_v2  ;;  %v507_v22 = vrot.slane %v506_v11, 2  ;;  %v1015_v24 = vpop.f32.mrb[6].mxu0  ;;  %v520_v28 = vadd.f32 %v519_v16, %v484_v7  ;;  %v1017_v29 = vpop.f32.mrb[6].mxu1 }
 0x11e   :  { %v369_v25 = vrot.slane %v368_v13, 1  ;;  %v501_v26 = vadd.f32 %v500_v14, %v499_v5  ;;  %v389_v27 = vadd.f32 %v388_v15, %v387_v6  ;;  %v1019_v30 = vpop.f32.mrb[7].mxu0  ;;  %v383_v33 = vrot.slane %v382_v19, 1  ;;  %v1021_v38 = vpop.f32.mrb[7].mxu1 }
 0x11f   :  { %v515_v34 = vadd.f32 %v514_v20, %v513_v9  ;;  %v376_v36 = vrot.slane %v375_v21, 1  ;;  %v508_v37 = vadd.f32 %v507_v22, %v506_v11  ;;  %v521_v46 = vrot.slane %v520_v28, 2 }
 0x120   :  { %v1023_v39 = vadd.f32 %v369_v25, %v368_v13  ;;  %v502_v44 = vrot.slane %v501_v26, 1  ;;  %v390_v45 = vrot.slane %v389_v27, 1  ;;  %v1025_v49 = vadd.f32 %v383_v33, %v382_v19 }
 0x121   :  { %v516_v50 = vrot.slane %v515_v34, 1  ;;  %v1027_v55 = vadd.f32 %v376_v36, %v375_v21  ;;  %v509_v56 = vrot.slane %v508_v37, 1  ;;  %v522_v60 = vadd.f32 %v521_v46, %v520_v28 }
 0x122   :  { %v1029_v57 = vadd.f32 %v502_v44, %v501_v26  ;;  %v1031_v58 = vadd.f32 %v390_v45, %v389_v27  ;;  %v736_v61 = vpack.c.bf16 %v999_v51, %v991_v43  ;;  %v248_v1 = vadd.f32 %v1003_v53, %v978_v31 }
 0x123   :  { %v1035_v62 = vadd.f32 %v516_v50, %v515_v34  ;;  %v428_v63 = vcombine.low %v1023_v39, %v1027_v55  ;;  %v1039_v0 = vadd.f32 %v509_v56, %v508_v37  ;;  %v523_v3 = vrot.slane %v522_v60, 1 }
 0x124   :  { %v429_v2 = vcombine.low %v1025_v49, %v1031_v58  ;;  %662 = vst [vmem:[#allocation8 + $0x8] sm:$0xff] %v736_v61  ;;  %v207_v4 = vadd.f32 %v1005_v54, %v980_v32  ;;  %v250_v43 = vadd.f32 %v249_v59, %v982_v35  ;;  %v287_v5 = vadd.f32 %v286_v12, %v984_v40 }
 0x125   :  { %v561_v51 = vcombine.low %v1029_v57, %v1039_v0  ;;  %v1052_v6 = vadd.f32 %v329_v17, %v986_v41  ;;  %v289_v31 = vadd.f32 %v288_v18, %v988_v42  ;;  %v1055_v53 = vadd.f32 %v523_v3, %v522_v60 }
 0x126   :  { %v739_v7 = vpack.c.bf16 %v207_v4, %v1001_v52  ;;  %v740_v8 = vpack.c.bf16 %v250_v43, %v248_v1  ;;  %v332_v9 = vadd.f32 %v331_v23, %v994_v47  ;;  %v393_v32 = vrot.slane %v287_v5, 4 }
 0x127   :  { %v485_v54 = vmul.f32 %v287_v5, %v287_v5  ;;  %v407_v35 = vrot.slane %v1052_v6, 4  ;;  %v487_v59 = vmul.f32 %v1052_v6, %v1052_v6  ;;  %v562_v10 = vcombine.low %v1035_v62, %v1055_v53 }
 0x128   :  { %665 = vst [vmem:[#allocation8 + $0x20] sm:$0xff] %v739_v7  ;;  %666 = vst [vmem:[#allocation8 + $0x28] sm:$0xff] %v740_v8  ;;  %v400_v11 = vrot.slane %v289_v31, 4  ;;  %v486_v12 = vmul.f32 %v289_v31, %v289_v31  ;;  %v737_v13 = vpack.c.bf16 %v289_v31, %v287_v5  ;;  %v394_v14 = vadd.f32 %v393_v32, %v287_v5 }
 0x129   :  { %v526_v52 = vrot.slane %v485_v54, 4  ;;  %v408_v15 = vadd.f32 %v407_v35, %v1052_v6  ;;  %v540_v16 = vrot.slane %v487_v59, 4  ;;  %v414_v19 = vrot.slane %v332_v9, 4 }
 0x12a   :  { %v401_v17 = vadd.f32 %v400_v11, %v289_v31  ;;  %v533_v18 = vrot.slane %v486_v12, 4  ;;  %663 = vst [vmem:[#allocation8 + $0x10] sm:$0xff] %v737_v13  ;;  %v488_v20 = vmul.f32 %v332_v9, %v332_v9  ;;  %v395_v21 = vrot.slane %v394_v14, 2 }
 0x12b   :  { %v527_v22 = vadd.f32 %v526_v52, %v485_v54  ;;  %v409_v23 = vrot.slane %v408_v15, 2  ;;  %v541_v25 = vadd.f32 %v540_v16, %v487_v59  ;;  %v415_v28 = vadd.f32 %v414_v19, %v332_v9 }
 0x12c   :  { %v402_v26 = vrot.slane %v401_v17, 2  ;;  %v534_v27 = vadd.f32 %v533_v18, %v486_v12  ;;  %v547_v33 = vrot.slane %v488_v20, 4  ;;  %v396_v34 = vadd.f32 %v395_v21, %v394_v14 }
 0x12d   :  { %v528_v36 = vrot.slane %v527_v22, 2  ;;  %v410_v37 = vadd.f32 %v409_v23, %v408_v15  ;;  %v542_v44 = vrot.slane %v541_v25, 2  ;;  %v416_v50 = vrot.slane %v415_v28, 2 }
 0x12e   :  { %v403_v45 = vadd.f32 %v402_v26, %v401_v17  ;;  %v535_v46 = vrot.slane %v534_v27, 2  ;;  %v548_v56 = vadd.f32 %v547_v33, %v488_v20  ;;  %v397_v60 = vrot.slane %v396_v34, 1 }
 0x12f   :  { %v529_v61 = vadd.f32 %v528_v36, %v527_v22  ;;  %v411_v1 = vrot.slane %v410_v37, 1  ;;  %v543_v3 = vadd.f32 %v542_v44, %v541_v25  ;;  %v417_v5 = vadd.f32 %v416_v50, %v415_v28 }
 0x130   :  { %v404_v4 = vrot.slane %v403_v45, 1  ;;  %v536_v43 = vadd.f32 %v535_v46, %v534_v27  ;;  %v549_v31 = vrot.slane %v548_v56, 2  ;;  %v398_v7 = vadd.f32 %v397_v60, %v396_v34 }
 0x131   :  { %v530_v8 = vrot.slane %v529_v61, 1  ;;  %v412_v32 = vadd.f32 %v411_v1, %v410_v37  ;;  %v544_v54 = vrot.slane %v543_v3, 1  ;;  %v418_v11 = vrot.slane %v417_v5, 1 }
 0x132   :  { %v405_v35 = vadd.f32 %v404_v4, %v403_v45  ;;  %v537_v59 = vrot.slane %v536_v43, 1  ;;  %v550_v12 = vadd.f32 %v549_v31, %v548_v56  ;;  %v738_v52 = vpack.c.bf16 %v332_v9, %v1052_v6 }
 0x133   :  { %v531_v13 = vadd.f32 %v530_v8, %v529_v61  ;;  %v545_v14 = vadd.f32 %v544_v54, %v543_v3  ;;  %v291_v15 = vadd.f32 %v1015_v24, %v984_v40  ;;  %v419_v18 = vadd.f32 %v418_v11, %v417_v5 }
 0x134   :  { %v430_v16 = vcombine.low %v398_v7, %v405_v35  ;;  %v538_v17 = vadd.f32 %v537_v59, %v536_v43  ;;  %v551_v19 = vrot.slane %v550_v12, 1  ;;  %664 = vst [vmem:[#allocation8 + $0x18] sm:$0xff] %v738_v52  ;;  %v334_v20 = vadd.f32 %v1017_v29, %v986_v41 }
 0x135   :  { %v293_v21 = vadd.f32 %v1019_v30, %v988_v42  ;;  %v336_v22 = vadd.f32 %v1021_v38, %v994_v47  ;;  %v438_v40 = vrot.slane %v428_v63, %v996_v48  ;;  %v431_v6 = vcombine.low %v412_v32, %v419_v18 }
 0x136   :  { %v563_v24 = vcombine.low %v531_v13, %v538_v17  ;;  %v552_v9 = vadd.f32 %v551_v19, %v550_v12  ;;  %v445_v23 = vrot.slane %v429_v2, %v996_v48  ;;  %v452_v42 = vrot.slane %v430_v16, %v996_v48 }
 0x137   :  { %v741_v41 = vpack.c.bf16 %v293_v21, %v291_v15  ;;  %v742_v29 = vpack.c.bf16 %v336_v22, %v334_v20  ;;  %v571_v47 = vrot.slane %v561_v51, %v996_v48  ;;  %v459_v38 = vrot.slane %v431_v6, %v996_v48 }
 0x138   :  { %v564_v30 = vcombine.low %v545_v14, %v552_v9  ;;  %v460_v39 = vcombine.low %v438_v40, %v445_v23  ;;  %v578_v49 = vrot.slane %v562_v10, %v996_v48  ;;  %v585_v55 = vrot.slane %v563_v24, %v996_v48 }
 0x139   :  { %667 = vst [vmem:[#allocation8 + $0x30] sm:$0xff] %v741_v41  ;;  %668 = vst [vmem:[#allocation8 + $0x38] sm:$0xff] %v742_v29  ;;  %v461_v58 = vcombine.low %v452_v42, %v459_v38 }
 0x13a   :  { %834 = shalt.err (!%p831_p0)
}
 0x13b   :  { %s835_s12 = scalar_lea.hbm %s1140_s3, 1024 }
 0x13c   :  { %p836_p1 = scmp.ne.s32.totalorder %s1140_s3, %s835_s12  ;;  %p839_p2 = scmp.lt.u32.totalorder %s835_s12, %s1140_s3 }
 0x13e   :  { %p841_p3 = pnand %p839_p2, %p836_p1 }
 0x140   :  { %844 = shalt.err (!%p841_p3)
}
 0x141   :  { %680 = dma.vmem_to_hbm [thread:$0]  %s675_s8, 1024, %s1140_s3, [#allocation4], %s898_s28, %s898_s28, %s899_s29   ;;  %v592_v57 = vrot.slane %v564_v30, %v996_v48  ;;  %v593_v62 = vcombine.low %v571_v47, %v578_v49  ;;  %v468_v63 = vrot.slane %v460_v39, %v996_v48  ;;  %v475_v0 = vrot.slane %v461_v58, %v996_v48 }
 0x142   :  { %s907_s18 = smov [#allocation9]   ;;  %s908_s20 = smov [#allocation11]  }
 0x143   :  { %v594_v2 = vcombine.low %v585_v55, %v592_v57  ;;  %s687_s19 = sshll.u32 %s907_s18, 4  ;;  %v476_v51 = vcombine.low %v468_v63, %v475_v0  ;;  %v601_v53 = vrot.slane %v593_v62, %v996_v48  ;;  %s697_s21 = sshll.u32 %s908_s20, 4  ;;  %s688_s19 = int_to_ptr.vmem [resolvable:$true] %s687_s19  ;;  %s698_s21 = int_to_ptr.vmem [resolvable:$true] %s697_s21 }
 0x144   :  { %s845_s3 = scalar_lea.vmem %s688_s19, 128  ;;  %p850_p5 = scmp.lt.s32.totalorder %s688_s19, %s688_s19 }
 0x145   :  { %v608_v10 = vrot.slane %v594_v2, %v996_v48  ;;  %479 = vst [vmem:[#allocation9] sm:$0xff] %v476_v51  ;;  %p846_p4 = scmp.ne.s32.totalorder %s688_s19, %s845_s3  ;;  %p851_p6 = scmp.lt.s32.totalorder %s845_s3, %s845_s3 }
 0x147   :  { %v609_v25 = vcombine.low %v601_v53, %v608_v10  ;;  %p852_p7 = por %p851_p6, %p850_p5 }
 0x149   :  { %p853_p8 = pnand %p852_p7, %p846_p4 }
 0x14b   :  { %856 = shalt.err (!%p853_p8)
}
 0x14c   :  { %s857_s22 = scalar_lea.hbm %s1141_s4, 128 }
 0x14d   :  { %p858_p9 = scmp.ne.s32.totalorder %s1141_s4, %s857_s22  ;;  %p861_p10 = scmp.lt.u32.totalorder %s857_s22, %s1141_s4 }
 0x14f   :  { %p863_p11 = pnand %p861_p10, %p858_p9 }
 0x151   :  { %866 = shalt.err (!%p863_p11)
}
 0x152   :  { %690 = dma.vmem_to_hbm [thread:$0]  %s688_s19, 128, %s1141_s4, [#allocation10]   ;;  %612 = vst [vmem:[#allocation11] sm:$0xff] %v609_v25 }
 0x153   :  { %s867_s6 = scalar_lea.vmem %s698_s21, 128  ;;  %p872_p13 = scmp.lt.s32.totalorder %s698_s21, %s698_s21 }
 0x154   :  { %p868_p12 = scmp.ne.s32.totalorder %s698_s21, %s867_s6  ;;  %p873_p0 = scmp.lt.s32.totalorder %s867_s6, %s867_s6 }
 0x156   :  { %p874_p1 = por %p873_p0, %p872_p13 }
 0x158   :  { %p875_p2 = pnand %p874_p1, %p868_p12 }
 0x15a   :  { %878 = shalt.err (!%p875_p2)
}
 0x15b   :  { %s879_s2 = scalar_lea.hbm %s1142_s5, 128 }
 0x15c   :  { %p880_p3 = scmp.ne.s32.totalorder %s1142_s5, %s879_s2  ;;  %p883_p4 = scmp.lt.u32.totalorder %s879_s2, %s1142_s5 }
 0x15e   :  { %p885_p5 = pnand %p883_p4, %p880_p3 }
 0x160   :  { %888 = shalt.err (!%p885_p5)
}
 0x161   :  { %700 = dma.vmem_to_hbm [thread:$0]  %s698_s21, 128, %s1142_s5, [#allocation10]  }
 0x162   :  { %893 = dma.done.wait [#allocation4], 1024  }
 0x163   :  { %894 = vsyncadd [#allocation4], 4294966272 }
 0x164   :  { %895 = dma.done.wait [#allocation10], 256  }
 0x165   :  { %896 = vsyncadd [#allocation10], 4294967040 }
 0x166   :  { %710 = vsyncpa [#allocation3], 1 }
 0x167   :  { %711 = vsyncpa [#allocation6], 1 }
 0x168   :  { %712 = vsyncpa [#allocation4], 1 }
 0x169   :  { %713 = vsyncpa [#allocation10], 1 }

</bundles_post_ra>
